<compile_context>
chip_gen: v5e
topology: v5e:2x2
jax: 0.10.0
libtpu: 0.0.40
codegen_flags: <defaults>
</compile_context>

<pallas_src>
import jax
import jax.numpy as jnp
from jax.experimental import pallas as pl
from jax.experimental.pallas import tpu as pltpu

# ---- module-consistent dimensions -------------------------------------------
N_TILES = 2            # tiles (instances) per WSI bag == PyTorch "batch_size"
C_IN = 4               # input channels
H = W = 16             # spatial size
HW = H * W             # 256
CHW = C_IN * HW        # 1024 (lane-dense contraction dim for the encoder)
D_ENC = 32             # encoder.out_dim
D_FC1 = 32             # fc1.out_dim
D_FC2 = 16             # fc2.out_dim
L_ATT = 16             # attention hidden dim
N_CLASSES = 2          # output classes

# ---- kernel blocking ---------------------------------------------------------
BAGS_PER_STEP = 8                      # bags processed per grid step
M_BLOCK = BAGS_PER_STEP * N_TILES      # 16 sublane-dense rows per matmul
OUT_LANES = 128                        # lane-dense packed output width

# ---- parameter-slab layout (rows of a [SLAB_ROWS, 128] f32 slab) -------------
R_W1 = 0                               # [D_ENC,  D_FC1]          rows 0..31
R_W2 = 32                              # [D_FC1,  D_FC2]          rows 32..63
R_WVUC = 64                            # [D_FC2,  2L+NC] (V|U|Wc) rows 64..79
R_B_ENC = 80                           # [1, D_ENC]
R_B1 = 88                              # [1, D_FC1]
R_B2 = 96                              # [1, D_FC2]
R_WATT = 104                           # [1, L_ATT]
R_BCLS = 112                           # [1, N_CLASSES]
SLAB_ROWS = 120                        # multiple of 8


def region_deepmil_kernel(x_ref, w_enc_ref, slab_ref, out_ref):
    # x_ref  : [M_BLOCK, CHW]   instance-major stacking of BAGS_PER_STEP bags
    # w_enc  : [CHW, D_ENC]     avg-pool already folded in
    # slab   : [SLAB_ROWS, 128] all small params
    # out    : [BAGS_PER_STEP, 128]  lanes [0,NC)=logits, [NC,NC+N)=attention
    x = x_ref[...]

    # encoder (pool folded into the weight): one K=1024 MXU push
    z1 = jnp.dot(x, w_enc_ref[...], preferred_element_type=jnp.float32)
    z1 = jnp.maximum(z1 + slab_ref[R_B_ENC:R_B_ENC + 1, :D_ENC], 0.0)    # [M, D_ENC]

    # fc1
    z2 = jnp.dot(z1, slab_ref[R_W1:R_W1 + D_ENC, :D_FC1],
                 preferred_element_type=jnp.float32)
    z2 = jnp.maximum(z2 + slab_ref[R_B1:R_B1 + 1, :D_FC1], 0.0)          # [M, D_FC1]

    # fc2
    z3 = jnp.dot(z2, slab_ref[R_W2:R_W2 + D_FC1, :D_FC2],
                 preferred_element_type=jnp.float32)
    z3 = jnp.maximum(z3 + slab_ref[R_B2:R_B2 + 1, :D_FC2], 0.0)          # [M, D_FC2]

    # fused V | U | classifier projection: one MXU push instead of three
    proj = jnp.dot(z3, slab_ref[R_WVUC:R_WVUC + D_FC2, :2 * L_ATT + N_CLASSES],
                   preferred_element_type=jnp.float32)                   # [M, 34]
    att_v = jnp.tanh(proj[:, :L_ATT])
    att_u = jax.nn.sigmoid(proj[:, L_ATT:2 * L_ATT])
    cls = proj[:, 2 * L_ATT:2 * L_ATT + N_CLASSES]                       # [M, NC]

    # gated attention scores via VPU mul + lane reduce (no 1-lane MXU push)
    gated = att_v * att_u
    w_att_row = slab_ref[R_WATT:R_WATT + 1, :L_ATT]                      # [1, L]
    scores = jnp.sum(gated * w_att_row, axis=-1, keepdims=True)          # [M, 1]

    # per-bag softmax over the N_TILES instances. Rows are instance-major:
    # rows [n*BAGS, (n+1)*BAGS) hold instance n of the BAGS bags in this step,
    # so the per-bag reduction is pure elementwise VPU work (no relayout).
    s_n = [scores[n * BAGS_PER_STEP:(n + 1) * BAGS_PER_STEP, :]
           for n in range(N_TILES)]
    c_n = [cls[n * BAGS_PER_STEP:(n + 1) * BAGS_PER_STEP, :]
           for n in range(N_TILES)]
    m = s_n[0]
    for n in range(1, N_TILES):
        m = jnp.maximum(m, s_n[n])
    e_n = [jnp.exp(s - m) for s in s_n]
    denom = e_n[0]
    for n in range(1, N_TILES):
        denom = denom + e_n[n]
    inv = pl.reciprocal(denom, approx=False)        # exact: keeps attn tolerance
    a_n = [e * inv for e in e_n]                    # each [BAGS, 1]

    # reassociated classifier: logits = sum_n attn_n * (z3 @ W_cls)_n + b_cls
    logits = a_n[0] * c_n[0]
    for n in range(1, N_TILES):
        logits = logits + a_n[n] * c_n[n]
    logits = logits + slab_ref[R_BCLS:R_BCLS + 1, :N_CLASSES]            # [BAGS, NC]

    attn = jnp.concatenate(a_n, axis=1)                                  # [BAGS, N]

    # single lane-dense [BAGS, 128] store; wrapper slices logits / attention out
    pad = jnp.zeros((BAGS_PER_STEP, OUT_LANES - N_CLASSES - N_TILES), jnp.float32)
    out_ref[...] = jnp.concatenate([logits, attn, pad], axis=1)


def pack_params(params):
    """Fold the avg-pool into the encoder weight and pack everything small
    into a single pre-padded [SLAB_ROWS, 128] VMEM slab."""
    (w_enc, b_enc, w1, b1, w2, b2, v, u, w_att, w_cls, b_cls) = params
    # W'[c*HW + s, d] = w_enc[c, d] / HW  =>  x_flat @ W' == mean_pool(x) @ w_enc
    w_enc_pool = jnp.repeat(w_enc.astype(jnp.float32) / HW, HW, axis=0)  # [CHW, D_ENC]

    slab = jnp.zeros((SLAB_ROWS, 128), jnp.float32)
    slab = slab.at[R_W1:R_W1 + D_ENC, :D_FC1].set(w1)
    slab = slab.at[R_W2:R_W2 + D_FC1, :D_FC2].set(w2)
    w_vuc = jnp.concatenate([v, u, w_cls], axis=1)                       # [D_FC2, 2L+NC]
    slab = slab.at[R_WVUC:R_WVUC + D_FC2, :2 * L_ATT + N_CLASSES].set(w_vuc)
    slab = slab.at[R_B_ENC, :D_ENC].set(b_enc[0])
    slab = slab.at[R_B1, :D_FC1].set(b1[0])
    slab = slab.at[R_B2, :D_FC2].set(b2[0])
    slab = slab.at[R_WATT, :L_ATT].set(w_att[:, 0])
    slab = slab.at[R_BCLS, :N_CLASSES].set(b_cls[0])
    return w_enc_pool, slab


def region_deepmil_forward(x, params):
    """x: [B, N_TILES, C, H, W] float32 — B independent bags, each being the
    module's `batch` of region tiles. Returns (logits [B, n_classes], A [B, N]).
    B == 1 reproduces the original single-bag module forward."""
    b, n, c, h, w = x.shape
    assert (n, c, h, w) == (N_TILES, C_IN, H, W)
    w_enc_pool, slab = pack_params(params)

    # pad the bag axis up to a multiple of BAGS_PER_STEP (padded bags sliced off)
    b_pad = ((b + BAGS_PER_STEP - 1) // BAGS_PER_STEP) * BAGS_PER_STEP
    if b_pad != b:
        x = jnp.concatenate(
            [x, jnp.zeros((b_pad - b, n, c, h, w), x.dtype)], axis=0)
    num_steps = b_pad // BAGS_PER_STEP

    # instance-major row stacking per grid step:
    #   row = g*M_BLOCK + instance*BAGS_PER_STEP + local_bag
    xs = x.reshape(num_steps, BAGS_PER_STEP, N_TILES, CHW)
    xs = jnp.transpose(xs, (0, 2, 1, 3)).reshape(num_steps * M_BLOCK, CHW)

    out = pl.pallas_call(
        region_deepmil_kernel,
        out_shape=jax.ShapeDtypeStruct((b_pad, OUT_LANES), jnp.float32),
        grid=(num_steps,),
        in_specs=[
            pl.BlockSpec((M_BLOCK, CHW), lambda g: (g, 0)),        # x block
            pl.BlockSpec((CHW, D_ENC), lambda g: (0, 0)),          # fetched once
            pl.BlockSpec((SLAB_ROWS, 128), lambda g: (0, 0)),      # fetched once
        ],
        out_specs=pl.BlockSpec((BAGS_PER_STEP, OUT_LANES), lambda g: (g, 0)),
        compiler_params=pltpu.CompilerParams(
            dimension_semantics=("parallel",)),   # shard bag-blocks across TCs (v7x)
    )(xs, w_enc_pool, slab)

    logits = out[:b, :N_CLASSES]
    attn = out[:b, N_CLASSES:N_CLASSES + N_TILES]
    return logits, attn


def make_params(key):
    """Deterministic Xavier-ish init for all weights/biases (float32)."""
    ks = jax.random.split(key, 8)

    def lin(k, fan_in, fan_out):
        scale = (2.0 / (fan_in + fan_out)) ** 0.5
        return scale * jax.random.normal(k, (fan_in, fan_out), jnp.float32)

    w_enc = lin(ks[0], C_IN, D_ENC)
    b_enc = jnp.zeros((1, D_ENC), jnp.float32)
    w1 = lin(ks[1], D_ENC, D_FC1)
    b1 = jnp.zeros((1, D_FC1), jnp.float32)
    w2 = lin(ks[2], D_FC1, D_FC2)
    b2 = jnp.zeros((1, D_FC2), jnp.float32)
    v = lin(ks[3], D_FC2, L_ATT)
    u = lin(ks[4], D_FC2, L_ATT)
    w_att = lin(ks[5], L_ATT, 1)
    w_cls = lin(ks[6], D_FC2, N_CLASSES)
    b_cls = jnp.zeros((1, N_CLASSES), jnp.float32)
    return (w_enc, b_enc, w1, b1, w2, b2, v, u, w_att, w_cls, b_cls)


def reference_forward(x, params):
    """Pure-JAX reference: the PyTorch single-bag forward, vmapped over bags."""
    (w_enc, b_enc, w1, b1, w2, b2, v, u, w_att, w_cls, b_cls) = params

    def one_bag(xb):                                   # xb: [N, C, H, W]
        pooled = jnp.mean(xb, axis=(2, 3))
        z1 = jax.nn.relu(pooled @ w_enc + b_enc)
        z2 = jax.nn.relu(z1 @ w1 + b1)
        z3 = jax.nn.relu(z2 @ w2 + b2)
        scores = (jnp.tanh(z3 @ v) * jax.nn.sigmoid(z3 @ u)) @ w_att   # [N, 1]
        attn = jax.nn.softmax(scores[:, 0])                            # [N]
        m = attn[None, :] @ z3                                         # [1, D_FC2]
        logits = (m @ w_cls + b_cls)[0]                                # [n_classes]
        return logits, attn

    return jax.vmap(one_bag)(x)


if __name__ == "__main__":
    key = jax.random.PRNGKey(0)
    k_x, k_p = jax.random.split(key)

    B = 16  # number of bags batched per call (2 grid steps of 8 bags)
    x = jax.random.normal(k_x, (B, N_TILES, C_IN, H, W), jnp.float32)
    params = make_params(k_p)

    fwd = jax.jit(region_deepmil_forward)
    logits, attn = fwd(x, params)
    logits, attn = jax.block_until_ready((logits, attn))

    ref_logits, ref_attn = reference_forward(x, params)

    assert logits.shape == (B, N_CLASSES) and attn.shape == (B, N_TILES)
    assert jnp.allclose(logits, ref_logits, atol=1e-4, rtol=1e-4)
    assert jnp.allclose(attn, ref_attn, atol=1e-5, rtol=1e-4)
    assert jnp.allclose(jnp.sum(attn, axis=1), 1.0, atol=1e-5)

    print("KERNEL_OK")
</pallas_src>

<mosaic_0001>
module attributes {stable_mosaic.version = 11 : i64} {
  func.func @region_deepmil_kernel(%arg0: i32, %arg1: memref<16x1024xf32, #tpu.memory_space<vmem>>, %arg2: memref<1024x32xf32, #tpu.memory_space<vmem>>, %arg3: memref<120x128xf32, #tpu.memory_space<vmem>>, %arg4: memref<8x128xf32, #tpu.memory_space<vmem>>) attributes {dimension_semantics = [#tpu.dimension_semantics<parallel>], iteration_bounds = array<i64: 2>, scalar_prefetch = 0 : i64, scratch_operands = 0 : i64, tpu.core_type = #tpu.core_type<tc>, window_params = [{transform_indices = @transform_0, window_bounds = array<i64: 16, 1024>}, {pipeline_mode = #tpu.pipeline_mode<synchronous>, transform_indices = @transform_1, window_bounds = array<i64: 1024, 32>}, {pipeline_mode = #tpu.pipeline_mode<synchronous>, transform_indices = @transform_2, window_bounds = array<i64: 120, 128>}, {transform_indices = @transform_3, window_bounds = array<i64: 8, 128>}]} {
    %c0 = arith.constant 0 : index
    %c0_0 = arith.constant 0 : index
    %0 = vector.load %arg1[%c0, %c0_0] : memref<16x1024xf32, #tpu.memory_space<vmem>>, vector<16x1024xf32>
    %c0_1 = arith.constant 0 : index
    %c0_2 = arith.constant 0 : index
    %1 = vector.load %arg2[%c0_1, %c0_2] : memref<1024x32xf32, #tpu.memory_space<vmem>>, vector<1024x32xf32>
    %cst = arith.constant dense<0.000000e+00> : vector<16x32xf32>
    %2 = tpu.matmul %0, %1, %cst {dimension_numbers = #tpu.dot_dimension_numbers<[1], [0], [0], [1], [0, 0, 1, 1], [], []>} : vector<16x1024xf32>, vector<1024x32xf32>, vector<16x32xf32> -> vector<16x32xf32>
    %c80 = arith.constant 80 : index
    %c0_3 = arith.constant 0 : index
    %3 = vector.load %arg3[%c80, %c0_3] : memref<120x128xf32, #tpu.memory_space<vmem>>, vector<1x32xf32>
    %4 = vector.broadcast %3 : vector<1x32xf32> to vector<16x32xf32>
    %5 = arith.addf %2, %4 : vector<16x32xf32>
    %cst_4 = arith.constant 0.000000e+00 : f32
    %6 = vector.broadcast %cst_4 : f32 to vector<16x32xf32>
    %7 = arith.maximumf %5, %6 : vector<16x32xf32>
    %c0_5 = arith.constant 0 : index
    %c0_6 = arith.constant 0 : index
    %8 = vector.load %arg3[%c0_5, %c0_6] : memref<120x128xf32, #tpu.memory_space<vmem>>, vector<32x32xf32>
    %cst_7 = arith.constant dense<0.000000e+00> : vector<16x32xf32>
    %9 = tpu.matmul %7, %8, %cst_7 {dimension_numbers = #tpu.dot_dimension_numbers<[1], [0], [0], [1], [0, 0, 1, 1], [], []>} : vector<16x32xf32>, vector<32x32xf32>, vector<16x32xf32> -> vector<16x32xf32>
    %c88 = arith.constant 88 : index
    %c0_8 = arith.constant 0 : index
    %10 = vector.load %arg3[%c88, %c0_8] : memref<120x128xf32, #tpu.memory_space<vmem>>, vector<1x32xf32>
    %11 = vector.broadcast %10 : vector<1x32xf32> to vector<16x32xf32>
    %12 = arith.addf %9, %11 : vector<16x32xf32>
    %cst_9 = arith.constant 0.000000e+00 : f32
    %13 = vector.broadcast %cst_9 : f32 to vector<16x32xf32>
    %14 = arith.maximumf %12, %13 : vector<16x32xf32>
    %c32 = arith.constant 32 : index
    %c0_10 = arith.constant 0 : index
    %15 = vector.load %arg3[%c32, %c0_10] : memref<120x128xf32, #tpu.memory_space<vmem>>, vector<32x16xf32>
    %cst_11 = arith.constant dense<0.000000e+00> : vector<16x16xf32>
    %16 = tpu.matmul %14, %15, %cst_11 {dimension_numbers = #tpu.dot_dimension_numbers<[1], [0], [0], [1], [0, 0, 1, 1], [], []>} : vector<16x32xf32>, vector<32x16xf32>, vector<16x16xf32> -> vector<16x16xf32>
    %c96 = arith.constant 96 : index
    %c0_12 = arith.constant 0 : index
    %17 = vector.load %arg3[%c96, %c0_12] : memref<120x128xf32, #tpu.memory_space<vmem>>, vector<1x16xf32>
    %18 = vector.broadcast %17 : vector<1x16xf32> to vector<16x16xf32>
    %19 = arith.addf %16, %18 : vector<16x16xf32>
    %cst_13 = arith.constant 0.000000e+00 : f32
    %20 = vector.broadcast %cst_13 : f32 to vector<16x16xf32>
    %21 = arith.maximumf %19, %20 : vector<16x16xf32>
    %c64 = arith.constant 64 : index
    %c0_14 = arith.constant 0 : index
    %22 = vector.load %arg3[%c64, %c0_14] : memref<120x128xf32, #tpu.memory_space<vmem>>, vector<16x34xf32>
    %cst_15 = arith.constant dense<0.000000e+00> : vector<16x34xf32>
    %23 = tpu.matmul %21, %22, %cst_15 {dimension_numbers = #tpu.dot_dimension_numbers<[1], [0], [0], [1], [0, 0, 1, 1], [], []>} : vector<16x16xf32>, vector<16x34xf32>, vector<16x34xf32> -> vector<16x34xf32>
    %24 = vector.extract_strided_slice %23 {offsets = [0, 0], sizes = [16, 16], strides = [1, 1]} : vector<16x34xf32> to vector<16x16xf32>
    %25 = math.tanh %24 : vector<16x16xf32>
    %26 = vector.extract_strided_slice %23 {offsets = [0, 16], sizes = [16, 16], strides = [1, 1]} : vector<16x34xf32> to vector<16x16xf32>
    %27 = arith.negf %26 : vector<16x16xf32>
    %28 = math.exp %27 : vector<16x16xf32>
    %cst_16 = arith.constant 1.000000e+00 : f32
    %29 = vector.broadcast %cst_16 : f32 to vector<16x16xf32>
    %30 = arith.addf %29, %28 : vector<16x16xf32>
    %31 = arith.divf %29, %30 : vector<16x16xf32>
    %32 = vector.extract_strided_slice %23 {offsets = [0, 32], sizes = [16, 2], strides = [1, 1]} : vector<16x34xf32> to vector<16x2xf32>
    %33 = arith.mulf %25, %31 : vector<16x16xf32>
    %c104 = arith.constant 104 : index
    %c0_17 = arith.constant 0 : index
    %34 = vector.load %arg3[%c104, %c0_17] : memref<120x128xf32, #tpu.memory_space<vmem>>, vector<1x16xf32>
    %35 = vector.broadcast %34 : vector<1x16xf32> to vector<16x16xf32>
    %36 = arith.mulf %33, %35 : vector<16x16xf32>
    %cst_18 = arith.constant dense<0.000000e+00> : vector<16xf32>
    %37 = vector.multi_reduction <add>, %36, %cst_18 [1] : vector<16x16xf32> to vector<16xf32>
    %38 = vector.shape_cast %37 : vector<16xf32> to vector<16x1xf32>
    %39 = vector.extract_strided_slice %38 {offsets = [0, 0], sizes = [8, 1], strides = [1, 1]} : vector<16x1xf32> to vector<8x1xf32>
    %40 = vector.extract_strided_slice %38 {offsets = [8, 0], sizes = [8, 1], strides = [1, 1]} : vector<16x1xf32> to vector<8x1xf32>
    %41 = vector.extract_strided_slice %32 {offsets = [0, 0], sizes = [8, 2], strides = [1, 1]} : vector<16x2xf32> to vector<8x2xf32>
    %42 = vector.extract_strided_slice %32 {offsets = [8, 0], sizes = [8, 2], strides = [1, 1]} : vector<16x2xf32> to vector<8x2xf32>
    %43 = arith.maximumf %39, %40 : vector<8x1xf32>
    %44 = arith.subf %39, %43 : vector<8x1xf32>
    %45 = math.exp %44 : vector<8x1xf32>
    %46 = arith.subf %40, %43 : vector<8x1xf32>
    %47 = math.exp %46 : vector<8x1xf32>
    %48 = arith.addf %45, %47 : vector<8x1xf32>
    %49 = tpu.reciprocal %48 : vector<8x1xf32> -> vector<8x1xf32>
    %50 = arith.mulf %45, %49 : vector<8x1xf32>
    %51 = arith.mulf %47, %49 : vector<8x1xf32>
    %52 = vector.broadcast %50 : vector<8x1xf32> to vector<8x2xf32>
    %53 = arith.mulf %52, %41 : vector<8x2xf32>
    %54 = vector.broadcast %51 : vector<8x1xf32> to vector<8x2xf32>
    %55 = arith.mulf %54, %42 : vector<8x2xf32>
    %56 = arith.addf %53, %55 : vector<8x2xf32>
    %c112 = arith.constant 112 : index
    %c0_19 = arith.constant 0 : index
    %57 = vector.load %arg3[%c112, %c0_19] : memref<120x128xf32, #tpu.memory_space<vmem>>, vector<1x2xf32>
    %58 = vector.broadcast %57 : vector<1x2xf32> to vector<8x2xf32>
    %59 = arith.addf %56, %58 : vector<8x2xf32>
    %60 = tpu.concatenate %50, %51 in 1 : vector<8x1xf32>, vector<8x1xf32> -> vector<8x2xf32>
    %cst_20 = arith.constant 0.000000e+00 : f32
    %61 = vector.broadcast %cst_20 : f32 to vector<8x124xf32>
    %62 = tpu.concatenate %59, %60, %61 in 1 : vector<8x2xf32>, vector<8x2xf32>, vector<8x124xf32> -> vector<8x128xf32>
    %c0_21 = arith.constant 0 : index
    %c0_22 = arith.constant 0 : index
    %63 = vector.load %arg4[%c0_21, %c0_22] : memref<8x128xf32, #tpu.memory_space<vmem>>, vector<8x128xf32>
    tpu.vector_store %arg4[%c0_21, %c0_22], %62 {strides = array<i32>} : memref<8x128xf32, #tpu.memory_space<vmem>>, vector<8x128xf32>,
    return
  }
  func.func @transform_0(%arg0: i32) -> (i32, i32) {
    %c0_i32 = arith.constant 0 : i32
    %c0_i32_0 = arith.constant 0 : i32
    return %arg0, %c0_i32 : i32, i32
  }
  func.func @transform_1(%arg0: i32) -> (i32, i32) {
    %c0_i32 = arith.constant 0 : i32
    %c0_i32_0 = arith.constant 0 : i32
    %c0_i32_1 = arith.constant 0 : i32
    return %c0_i32, %c0_i32_0 : i32, i32
  }
  func.func @transform_2(%arg0: i32) -> (i32, i32) {
    %c0_i32 = arith.constant 0 : i32
    %c0_i32_0 = arith.constant 0 : i32
    %c0_i32_1 = arith.constant 0 : i32
    return %c0_i32, %c0_i32_0 : i32, i32
  }
  func.func @transform_3(%arg0: i32) -> (i32, i32) {
    %c0_i32 = arith.constant 0 : i32
    %c0_i32_0 = arith.constant 0 : i32
    return %arg0, %c0_i32 : i32, i32
  }
}

</mosaic_0001>

<bundles_post_ra>
// kernel: region_deepmil_forward.1
= control target key start
LH: loop header
LB: loop body
LE: loop exit
PB: predicated region body
PF: predicated region fallthrough
CT: control target
= control target key end

     0   :  { %s866_s12 = smov 0   ;;  %s1366_s0 = inlined_call_operand.vmem [shape: f32[32,1024], index: 0, kind: input, shape index: {}]   ;;  %s1367_s1 = inlined_call_operand.vmem [shape: f32[1024,32], index: 1, kind: input, shape index: {}]   ;;  %s1368_s2 = inlined_call_operand.vmem [shape: f32[120,128], index: 2, kind: input, shape index: {}]   ;;  %s1369_s3 = inlined_call_operand.vmem [shape: f32[16,128], index: 3, kind: output, shape index: {}]  }
   0x1 LB: > { %s872_s13 = sadd.s32 4294967295, %s840_s12   ;;  %p779_p0 = scmp.ge.s32.totalorder %s840_s12, 1  ;;  %s840_s12 = sphi %s866_s12, %s13_s12  }
   0x2   : > { %p139_p1 = scmp.lt.s32.totalorder %s840_s12, 3 }
   0x4   : > { %p140_p2 = pnand %p779_p0, %p139_p1 }
   0x5   : > { %s780_s11 = sshll.u32 (!%p140_p2), %s872_s13, 1  ;;  %s842_s4 = smov (!%p140_p2), 112  }
   0x6   : > { %143 = sbr.rel (%p140_p2) target bundleno = 1042 (0x412), region = 32  ;;  %p1083_p3 = scmp.lt.s32.totalorder (!%p140_p2), %s780_s11, 3 }
   0x7   : > { %s843_s7 = smov (!%p140_p2), 32   ;;  %s844_s9 = smov (!%p140_p2), 2  }
   0x8   : > { %s845_s10 = smov (!%p140_p2), 96   ;;  %p170_p4 = scmp.lt.s32.totalorder (!%p140_p2), %s872_s13, 1 }
   0xb   : > { %v205_v0 = vld [vmem:[%s1367_s1 + $0x78] sm:$0xff]  ;;  %v204_v2 = vld [vmem:[%s1367_s1 + $0x70] sm:$0xff]  ;;  %v203_v6 = vld [vmem:[%s1367_s1 + $0x68] sm:$0xff]  ;;  %s1372_s11 = smov (!%p1083_p3, %s780_s11), 3  ;;  %vm512_vm0 = vcmask 261120   ;;  %vm583_vm1 = vcmask 130048  }
   0xc   : > { %v237_v1 = vld [vmem:[%s1367_s1 + $0x178] sm:$0xff]  ;;  %320 = vmatpush.msra.mxu0 %v205_v0  ;;  %v236_v4 = vld [vmem:[%s1367_s1 + $0x170] sm:$0xff]  ;;  %v235_v8 = vld [vmem:[%s1367_s1 + $0x168] sm:$0xff]  ;;  %s794_s8 = sshll.u32 %s1372_s11, 6  ;;  %vm707_vm14 = vcmask 7168   ;;  %s1374_s13 = smov (!%p170_p4, %s872_s13), 1 }
   0xd   : > { %366 = vmatpush.msra.mxu2 %v237_v1  ;;  %v221_v3 = vld [vmem:[%s1367_s1 + $0xf8] sm:$0xff]  ;;  %v220_v7 = vld [vmem:[%s1367_s1 + $0xf0] sm:$0xff]  ;;  %v219_v10 = vld [vmem:[%s1367_s1 + $0xe8] sm:$0xff]  ;;  %s1163_s25 = scalar_lea.vmem %s1366_s0, %s794_s8  ;;  %s783_s14 = sshll.u32 %s1374_s13, 3  ;;  %vm717_vm15 = vcmask 15360  }
   0xe   : > { %v253_v5 = vld [vmem:[%s1367_s1 + $0x1f8] sm:$0xff]  ;;  %343 = vmatpush.msra.mxu1 %v221_v3  ;;  %321 = vmatpush.msra.mxu0 %v204_v2  ;;  %v252_v9 = vld [vmem:[%s1367_s1 + $0x1f0] sm:$0xff]  ;;  %v202_v11 = vld [vmem:[%s1367_s1 + $0x60] sm:$0xff]  ;;  %s173_s17 = scalar_lea.vmem %s1369_s3, %s783_s14 }
   0xf   : > { %389 = vmatpush.msra.mxu3 %v253_v5  ;;  %367 = vmatpush.msra.mxu2 %v236_v4  ;;  %v234_v12 = vld [vmem:[%s1367_s1 + $0x160] sm:$0xff]  ;;  %v251_v13 = vld [vmem:[%s1367_s1 + $0x1e8] sm:$0xff]  ;;  %v201_v16 = vld [vmem:[%s1367_s1 + $0x58] sm:$0xff] }
  0x10   : > { %344 = vmatpush.msra.mxu1 %v220_v7  ;;  %322 = vmatpush.msra.mxu0 %v203_v6  ;;  %v218_v14 = vld [vmem:[%s1367_s1 + $0xe0] sm:$0xff]  ;;  %v233_v17 = vld [vmem:[%s1367_s1 + $0x158] sm:$0xff]  ;;  %v200_v20 = vld [vmem:[%s1367_s1 + $0x50] sm:$0xff] }
  0x11   : > { %390 = vmatpush.msra.mxu3 %v252_v9  ;;  %368 = vmatpush.msra.mxu2 %v235_v8  ;;  %v250_v15 = vld [vmem:[%s1367_s1 + $0x1e0] sm:$0xff]  ;;  %v217_v18 = vld [vmem:[%s1367_s1 + $0xd8] sm:$0xff]  ;;  %v232_v21 = vld [vmem:[%s1367_s1 + $0x150] sm:$0xff] }
  0x12   : > { %345 = vmatpush.msra.mxu1 %v219_v10  ;;  %323 = vmatpush.msra.mxu0 %v202_v11  ;;  %v249_v19 = vld [vmem:[%s1367_s1 + $0x1d8] sm:$0xff]  ;;  %v216_v22 = vld [vmem:[%s1367_s1 + $0xd0] sm:$0xff]  ;;  %v199_v24 = vld [vmem:[%s1367_s1 + $0x48] sm:$0xff] }
  0x13   : > { %391 = vmatpush.msra.mxu3 %v251_v13  ;;  %369 = vmatpush.msra.mxu2 %v234_v12  ;;  %v248_v23 = vld [vmem:[%s1367_s1 + $0x1d0] sm:$0xff]  ;;  %v231_v25 = vld [vmem:[%s1367_s1 + $0x148] sm:$0xff]  ;;  %v198_v28 = vld [vmem:[%s1367_s1 + $0x40] sm:$0xff] }
  0x14   : > { %346 = vmatpush.msra.mxu1 %v218_v14  ;;  %324 = vmatpush.msra.mxu0 %v201_v16  ;;  %v215_v26 = vld [vmem:[%s1367_s1 + $0xc8] sm:$0xff]  ;;  %v230_v29 = vld [vmem:[%s1367_s1 + $0x140] sm:$0xff]  ;;  %v197_v32 = vld [vmem:[%s1367_s1 + $0x38] sm:$0xff] }
  0x15   : > { %392 = vmatpush.msra.mxu3 %v250_v15  ;;  %370 = vmatpush.msra.mxu2 %v233_v17  ;;  %v247_v27 = vld [vmem:[%s1367_s1 + $0x1c8] sm:$0xff]  ;;  %v214_v30 = vld [vmem:[%s1367_s1 + $0xc0] sm:$0xff]  ;;  %v229_v33 = vld [vmem:[%s1367_s1 + $0x138] sm:$0xff] }
  0x16   : > { %347 = vmatpush.msra.mxu1 %v217_v18  ;;  %325 = vmatpush.msra.mxu0 %v200_v20  ;;  %v246_v31 = vld [vmem:[%s1367_s1 + $0x1c0] sm:$0xff]  ;;  %v213_v34 = vld [vmem:[%s1367_s1 + $0xb8] sm:$0xff]  ;;  %v196_v36 = vld [vmem:[%s1367_s1 + $0x30] sm:$0xff] }
  0x17   : > { %393 = vmatpush.msra.mxu3 %v249_v19  ;;  %371 = vmatpush.msra.mxu2 %v232_v21  ;;  %v245_v35 = vld [vmem:[%s1367_s1 + $0x1b8] sm:$0xff]  ;;  %v228_v37 = vld [vmem:[%s1367_s1 + $0x130] sm:$0xff]  ;;  %v195_v40 = vld [vmem:[%s1367_s1 + $0x28] sm:$0xff] }
  0x18   : > { %348 = vmatpush.msra.mxu1 %v216_v22  ;;  %326 = vmatpush.msra.mxu0 %v199_v24  ;;  %v212_v38 = vld [vmem:[%s1367_s1 + $0xb0] sm:$0xff]  ;;  %v227_v41 = vld [vmem:[%s1367_s1 + $0x128] sm:$0xff]  ;;  %v194_v44 = vld [vmem:[%s1367_s1 + $0x20] sm:$0xff] }
  0x19   : > { %394 = vmatpush.msra.mxu3 %v248_v23  ;;  %372 = vmatpush.msra.mxu2 %v231_v25  ;;  %v244_v39 = vld [vmem:[%s1367_s1 + $0x1b0] sm:$0xff]  ;;  %v211_v42 = vld [vmem:[%s1367_s1 + $0xa8] sm:$0xff]  ;;  %v226_v45 = vld [vmem:[%s1367_s1 + $0x120] sm:$0xff] }
  0x1a   : > { %349 = vmatpush.msra.mxu1 %v215_v26  ;;  %327 = vmatpush.msra.mxu0 %v198_v28  ;;  %v243_v43 = vld [vmem:[%s1367_s1 + $0x1a8] sm:$0xff]  ;;  %v210_v46 = vld [vmem:[%s1367_s1 + $0xa0] sm:$0xff]  ;;  %v193_v48 = vld [vmem:[%s1367_s1 + $0x18] sm:$0xff] }
  0x1b   : > { %395 = vmatpush.msra.mxu3 %v247_v27  ;;  %373 = vmatpush.msra.mxu2 %v230_v29  ;;  %v242_v47 = vld [vmem:[%s1367_s1 + $0x1a0] sm:$0xff]  ;;  %v225_v49 = vld [vmem:[%s1367_s1 + $0x118] sm:$0xff]  ;;  %v192_v52 = vld [vmem:[%s1367_s1 + $0x10] sm:$0xff] }
  0x1c   : > { %350 = vmatpush.msra.mxu1 %v214_v30  ;;  %328 = vmatpush.msra.mxu0 %v197_v32  ;;  %v209_v50 = vld [vmem:[%s1367_s1 + $0x98] sm:$0xff]  ;;  %v224_v53 = vld [vmem:[%s1367_s1 + $0x110] sm:$0xff]  ;;  %v191_v56 = vld [vmem:[%s1367_s1 + $0x8] sm:$0xff] }
  0x1d   : > { %396 = vmatpush.msra.mxu3 %v246_v31  ;;  %374 = vmatpush.msra.mxu2 %v229_v33  ;;  %v241_v51 = vld [vmem:[%s1367_s1 + $0x198] sm:$0xff]  ;;  %v208_v54 = vld [vmem:[%s1367_s1 + $0x90] sm:$0xff]  ;;  %v223_v57 = vld [vmem:[%s1367_s1 + $0x108] sm:$0xff] }
  0x1e   : > { %351 = vmatpush.msra.mxu1 %v213_v34  ;;  %329 = vmatpush.msra.mxu0 %v196_v36  ;;  %v240_v55 = vld [vmem:[%s1367_s1 + $0x190] sm:$0xff]  ;;  %v207_v58 = vld [vmem:[%s1367_s1 + $0x88] sm:$0xff]  ;;  %v190_v60 = vld [vmem:[%s1367_s1] sm:$0xff] }
  0x1f   : > { %397 = vmatpush.msra.mxu3 %v245_v35  ;;  %375 = vmatpush.msra.mxu2 %v228_v37  ;;  %v239_v59 = vld [vmem:[%s1367_s1 + $0x188] sm:$0xff]  ;;  %v222_v61 = vld [vmem:[%s1367_s1 + $0x100] sm:$0xff]  ;;  %v269_v62 = vld [vmem:[%s1367_s1 + $0x278] sm:$0xff] }
  0x20   : > { %352 = vmatpush.msra.mxu1 %v212_v38  ;;  %330 = vmatpush.msra.mxu0 %v195_v40  ;;  %v301_v63 = vld [vmem:[%s1367_s1 + $0x378] sm:$0xff]  ;;  %v206_v0 = vld [vmem:[%s1367_s1 + $0x80] sm:$0xff]  ;;  %v268_v2 = vld [vmem:[%s1367_s1 + $0x270] sm:$0xff] }
  0x21   : > { %398 = vmatpush.msra.mxu3 %v244_v39  ;;  %376 = vmatpush.msra.mxu2 %v227_v41  ;;  %v238_v1 = vld [vmem:[%s1367_s1 + $0x180] sm:$0xff]  ;;  %v285_v3 = vld [vmem:[%s1367_s1 + $0x2f8] sm:$0xff]  ;;  %v300_v4 = vld [vmem:[%s1367_s1 + $0x370] sm:$0xff] }
  0x22   : > { %353 = vmatpush.msra.mxu1 %v211_v42  ;;  %331 = vmatpush.msra.mxu0 %v194_v44  ;;  %v317_v5 = vld [vmem:[%s1367_s1 + $0x3f8] sm:$0xff]  ;;  %v267_v6 = vld [vmem:[%s1367_s1 + $0x268] sm:$0xff]  ;;  %v284_v7 = vld [vmem:[%s1367_s1 + $0x2f0] sm:$0xff] }
  0x23   : > { %399 = vmatpush.msra.mxu3 %v243_v43  ;;  %377 = vmatpush.msra.mxu2 %v226_v45  ;;  %v299_v8 = vld [vmem:[%s1367_s1 + $0x368] sm:$0xff]  ;;  %v316_v9 = vld [vmem:[%s1367_s1 + $0x3f0] sm:$0xff]  ;;  %v266_v10 = vld [vmem:[%s1367_s1 + $0x260] sm:$0xff] }
  0x24   : > { %354 = vmatpush.msra.mxu1 %v210_v46  ;;  %332 = vmatpush.msra.mxu0 %v193_v48  ;;  %v283_v11 = vld [vmem:[%s1367_s1 + $0x2e8] sm:$0xff]  ;;  %v298_v12 = vld [vmem:[%s1367_s1 + $0x360] sm:$0xff]  ;;  %v265_v14 = vld [vmem:[%s1367_s1 + $0x258] sm:$0xff] }
  0x25   : > { %400 = vmatpush.msra.mxu3 %v242_v47  ;;  %378 = vmatpush.msra.mxu2 %v225_v49  ;;  %v315_v13 = vld [vmem:[%s1367_s1 + $0x3e8] sm:$0xff]  ;;  %v282_v15 = vld [vmem:[%s1367_s1 + $0x2e0] sm:$0xff]  ;;  %v297_v16 = vld [vmem:[%s1367_s1 + $0x358] sm:$0xff] }
  0x26   : > { %355 = vmatpush.msra.mxu1 %v209_v50  ;;  %333 = vmatpush.msra.mxu0 %v192_v52  ;;  %v314_v17 = vld [vmem:[%s1367_s1 + $0x3e0] sm:$0xff]  ;;  %v264_v18 = vld [vmem:[%s1367_s1 + $0x250] sm:$0xff]  ;;  %v281_v19 = vld [vmem:[%s1367_s1 + $0x2d8] sm:$0xff] }
  0x27   : > { %401 = vmatpush.msra.mxu3 %v241_v51  ;;  %379 = vmatpush.msra.mxu2 %v224_v53  ;;  %v296_v20 = vld [vmem:[%s1367_s1 + $0x350] sm:$0xff]  ;;  %v313_v21 = vld [vmem:[%s1367_s1 + $0x3d8] sm:$0xff]  ;;  %v263_v22 = vld [vmem:[%s1367_s1 + $0x248] sm:$0xff] }
  0x28   : > { %356 = vmatpush.msra.mxu1 %v208_v54  ;;  %334 = vmatpush.msra.mxu0 %v191_v56  ;;  %v280_v23 = vld [vmem:[%s1367_s1 + $0x2d0] sm:$0xff]  ;;  %v295_v24 = vld [vmem:[%s1367_s1 + $0x348] sm:$0xff]  ;;  %v262_v26 = vld [vmem:[%s1367_s1 + $0x240] sm:$0xff] }
  0x29   : > { %402 = vmatpush.msra.mxu3 %v240_v55  ;;  %380 = vmatpush.msra.mxu2 %v223_v57  ;;  %v312_v25 = vld [vmem:[%s1367_s1 + $0x3d0] sm:$0xff]  ;;  %v279_v27 = vld [vmem:[%s1367_s1 + $0x2c8] sm:$0xff]  ;;  %v294_v28 = vld [vmem:[%s1367_s1 + $0x340] sm:$0xff] }
  0x2a   : > { %357 = vmatpush.msra.mxu1 %v207_v58  ;;  %335 = vmatpush.msra.mxu0 %v190_v60  ;;  %v311_v29 = vld [vmem:[%s1367_s1 + $0x3c8] sm:$0xff]  ;;  %v174_v30 = vld [vmem:[%s1163_s25] sm:$0xff]  ;;  %v176_v31 = vld [vmem:[%s1163_s25 + $0x10] sm:$0xff] }
  0x2b   : > { %403 = vmatpush.msra.mxu3 %v239_v59  ;;  %381 = vmatpush.msra.mxu2 %v222_v61  ;;  %v261_v32 = vld [vmem:[%s1367_s1 + $0x238] sm:$0xff]  ;;  %v278_v33 = vld [vmem:[%s1367_s1 + $0x2c0] sm:$0xff]  ;;  %v175_v36 = vld [vmem:[%s1163_s25 + $0x8] sm:$0xff] }
  0x2c   : > { %412 = vmatpush.msrb.mxu0 %v269_v62  ;;  %358 = vmatpush.msra.mxu1 %v206_v0  ;;  %v293_v34 = vld [vmem:[%s1367_s1 + $0x338] sm:$0xff]  ;;  %v310_v35 = vld [vmem:[%s1367_s1 + $0x3c0] sm:$0xff]  ;;  %v260_v38 = vld [vmem:[%s1367_s1 + $0x230] sm:$0xff] }
  0x2d   : > { %458 = vmatpush.msrb.mxu2 %v301_v63  ;;  %404 = vmatpush.msra.mxu3 %v238_v1  ;;  %v177_v37 = vld [vmem:[%s1163_s25 + $0x18] sm:$0xff]  ;;  %v292_v40 = vld [vmem:[%s1367_s1 + $0x330] sm:$0xff]  ;;  %v259_v42 = vld [vmem:[%s1367_s1 + $0x228] sm:$0xff] }
  0x2e   : > { %413 = vmatpush.msrb.mxu0 %v268_v2  ;;  %435 = vmatpush.msrb.mxu1 %v285_v3  ;;  %v277_v39 = vld [vmem:[%s1367_s1 + $0x2b8] sm:$0xff]  ;;  %v276_v43 = vld [vmem:[%s1367_s1 + $0x2b0] sm:$0xff]  ;;  %v291_v44 = vld [vmem:[%s1367_s1 + $0x328] sm:$0xff] }
  0x2f   : > { %459 = vmatpush.msrb.mxu2 %v300_v4  ;;  %481 = vmatpush.msrb.mxu3 %v317_v5  ;;  %v309_v41 = vld [vmem:[%s1367_s1 + $0x3b8] sm:$0xff]  ;;  %v308_v45 = vld [vmem:[%s1367_s1 + $0x3b0] sm:$0xff]  ;;  %v258_v46 = vld [vmem:[%s1367_s1 + $0x220] sm:$0xff] }
  0x30   : > { %414 = vmatpush.msrb.mxu0 %v267_v6  ;;  %436 = vmatpush.msrb.mxu1 %v284_v7  ;;  %v275_v47 = vld [vmem:[%s1367_s1 + $0x2a8] sm:$0xff]  ;;  %v290_v48 = vld [vmem:[%s1367_s1 + $0x320] sm:$0xff]  ;;  %v184_v51 = vld [vmem:[%s1163_s25 + $0x50] sm:$0xff] }
  0x31   : > { %460 = vmatpush.msrb.mxu2 %v299_v8  ;;  %482 = vmatpush.msrb.mxu3 %v316_v9  ;;  %v307_v49 = vld [vmem:[%s1367_s1 + $0x3a8] sm:$0xff]  ;;  %v182_v50 = vld [vmem:[%s1163_s25 + $0x40] sm:$0xff]  ;;  %v257_v52 = vld [vmem:[%s1367_s1 + $0x218] sm:$0xff] }
  0x32   : > { %415 = vmatpush.msrb.mxu0 %v266_v10  ;;  %437 = vmatpush.msrb.mxu1 %v283_v11  ;;  %v274_v53 = vld [vmem:[%s1367_s1 + $0x2a0] sm:$0xff]  ;;  %v289_v54 = vld [vmem:[%s1367_s1 + $0x318] sm:$0xff]  ;;  %v183_v56 = vld [vmem:[%s1163_s25 + $0x48] sm:$0xff] }
  0x33   : > { %461 = vmatpush.msrb.mxu2 %v298_v12  ;;  %483 = vmatpush.msrb.mxu3 %v315_v13  ;;  %v306_v55 = vld [vmem:[%s1367_s1 + $0x3a0] sm:$0xff]  ;;  %v185_v57 = vld [vmem:[%s1163_s25 + $0x58] sm:$0xff]  ;;  %v256_v58 = vld [vmem:[%s1367_s1 + $0x210] sm:$0xff] }
  0x34   : > { %416 = vmatpush.msrb.mxu0 %v265_v14  ;;  %438 = vmatpush.msrb.mxu1 %v282_v15  ;;  %v273_v59 = vld [vmem:[%s1367_s1 + $0x298] sm:$0xff]  ;;  %v288_v60 = vld [vmem:[%s1367_s1 + $0x310] sm:$0xff]  ;;  %v255_v62 = vld [vmem:[%s1367_s1 + $0x208] sm:$0xff] }
  0x35   : > { %462 = vmatpush.msrb.mxu2 %v297_v16  ;;  %484 = vmatpush.msrb.mxu3 %v314_v17  ;;  %v305_v61 = vld [vmem:[%s1367_s1 + $0x398] sm:$0xff]  ;;  %v272_v63 = vld [vmem:[%s1367_s1 + $0x290] sm:$0xff]  ;;  %v287_v0 = vld [vmem:[%s1367_s1 + $0x308] sm:$0xff] }
  0x36   : > { %417 = vmatpush.msrb.mxu0 %v264_v18  ;;  %439 = vmatpush.msrb.mxu1 %v281_v19  ;;  %v304_v1 = vld [vmem:[%s1367_s1 + $0x390] sm:$0xff]  ;;  %v254_v2 = vld [vmem:[%s1367_s1 + $0x200] sm:$0xff]  ;;  %v271_v3 = vld [vmem:[%s1367_s1 + $0x288] sm:$0xff] }
  0x37   : > { %463 = vmatpush.msrb.mxu2 %v296_v20  ;;  %485 = vmatpush.msrb.mxu3 %v313_v21  ;;  %v286_v4 = vld [vmem:[%s1367_s1 + $0x300] sm:$0xff]  ;;  %v303_v5 = vld [vmem:[%s1367_s1 + $0x388] sm:$0xff]  ;;  %v180_v7 = vld [vmem:[%s1163_s25 + $0x30] sm:$0xff] }
  0x38   : > { %418 = vmatpush.msrb.mxu0 %v263_v22  ;;  %440 = vmatpush.msrb.mxu1 %v280_v23  ;;  %v178_v6 = vld [vmem:[%s1163_s25 + $0x20] sm:$0xff]  ;;  %v179_v10 = vld [vmem:[%s1163_s25 + $0x28] sm:$0xff]  ;;  %v181_v11 = vld [vmem:[%s1163_s25 + $0x38] sm:$0xff] }
  0x39   : > { %464 = vmatpush.msrb.mxu2 %v295_v24  ;;  %486 = vmatpush.msrb.mxu3 %v312_v25  ;;  %v270_v8 = vld [vmem:[%s1367_s1 + $0x280] sm:$0xff]  ;;  %v188_v13 = vld [vmem:[%s1163_s25 + $0x70] sm:$0xff]  ;;  %v187_v14 = vld [vmem:[%s1163_s25 + $0x68] sm:$0xff] }
  0x3a   : > { %419 = vmatpush.msrb.mxu0 %v262_v26  ;;  %441 = vmatpush.msrb.mxu1 %v279_v27  ;;  %v302_v9 = vld [vmem:[%s1367_s1 + $0x380] sm:$0xff]  ;;  %v189_v15 = vld [vmem:[%s1163_s25 + $0x78] sm:$0xff]  ;;  %v508_v17 = vld [vmem:[%s1368_s2 + $0x10] sm:$0xff] }
  0x3b   : > { %465 = vmatpush.msrb.mxu2 %v294_v28  ;;  %487 = vmatpush.msrb.mxu3 %v311_v29  ;;  %v186_v12 = vld [vmem:[%s1163_s25 + $0x60] sm:$0xff]  ;;  %v509_v16 = vld [vmem:[%s1368_s2 + $0x18] sm:$0xff]  ;;  %v507_v18 = vld [vmem:[%s1368_s2 + $0x8] sm:$0xff] }
  0x3c   : > { %336 = vmatmul.f32.vlgmr.msra.gmra.mxu0 %v174_v30  ;;  %382 = vmatmul.f32.vlgmr.msra.gmra.mxu2 %v176_v31  ;;  %v506_v19 = vld [vmem:[%s1368_s2] sm:$0xff]  ;;  %v811_v21 = vld [vmem:[%s1368_s2 + $0x50] ss:$0 sm:$0xff]  ;;  %v547_v26 = vld [vmem:[%s1368_s2 + $0x38] sm:$0xff] }
  0x3d   : > { %420 = vmatpush.msrb.mxu0 %v261_v32  ;;  %442 = vmatpush.msrb.mxu1 %v278_v33  ;;  %v546_v27 = vld [vmem:[%s1368_s2 + $0x30] sm:$0xff] }
  0x3e   : > { %466 = vmatpush.msrb.mxu2 %v293_v34  ;;  %488 = vmatpush.msrb.mxu3 %v310_v35 }
  0x3f   : > { %359 = vmatmul.f32.vlgmr.msra.gmra.mxu1 %v175_v36  ;;  %405 = vmatmul.f32.vlgmr.msra.gmra.mxu3 %v177_v37 }
  0x40   : > { %421 = vmatpush.msrb.mxu0 %v260_v38  ;;  %443 = vmatpush.msrb.mxu1 %v277_v39 }
  0x41   : > { %467 = vmatpush.msrb.mxu2 %v292_v40  ;;  %489 = vmatpush.msrb.mxu3 %v309_v41 }
  0x42   : > { %422 = vmatpush.msrb.mxu0 %v259_v42  ;;  %444 = vmatpush.msrb.mxu1 %v276_v43 }
  0x43   : > { %468 = vmatpush.msrb.mxu2 %v291_v44  ;;  %490 = vmatpush.msrb.mxu3 %v308_v45 }
  0x44   : > { %423 = vmatpush.msrb.mxu0 %v258_v46  ;;  %445 = vmatpush.msrb.mxu1 %v275_v47 }
  0x45   : > { %469 = vmatpush.msrb.mxu2 %v290_v48  ;;  %491 = vmatpush.msrb.mxu3 %v307_v49 }
  0x46   : > { %339 = vmatmul.f32.gmra.mxu0 %v182_v50  ;;  %385 = vmatmul.f32.gmra.mxu2 %v184_v51 }
  0x47   : > { %424 = vmatpush.msrb.mxu0 %v257_v52  ;;  %446 = vmatpush.msrb.mxu1 %v274_v53 }
  0x48   : > { %470 = vmatpush.msrb.mxu2 %v289_v54  ;;  %492 = vmatpush.msrb.mxu3 %v306_v55 }
  0x49   : > { %362 = vmatmul.f32.gmra.mxu1 %v183_v56  ;;  %408 = vmatmul.f32.gmra.mxu3 %v185_v57  ;;  %v545_v57 = vld [vmem:[%s1368_s2 + $0x28] sm:$0xff] }
  0x4a   : > { %425 = vmatpush.msrb.mxu0 %v256_v58  ;;  %447 = vmatpush.msrb.mxu1 %v273_v59  ;;  %v544_v58 = vld [vmem:[%s1368_s2 + $0x20] sm:$0xff]  ;;  %v582_v59 = vld [vmem:[%s1368_s2 + $0x48] sm:$0xff] }
  0x4b   : > { %471 = vmatpush.msrb.mxu2 %v288_v60  ;;  %493 = vmatpush.msrb.mxu3 %v305_v61  ;;  %v812_v60 = vld [vmem:[%s1368_s2 + $0x58] ss:$0 sm:$0xff] }
  0x4c   : > { %426 = vmatpush.msrb.mxu0 %v255_v62  ;;  %448 = vmatpush.msrb.mxu1 %v272_v63 }
  0x4d   : > { %472 = vmatpush.msrb.mxu2 %v287_v0  ;;  %494 = vmatpush.msrb.mxu3 %v304_v1 }
  0x4e   : > { %427 = vmatpush.msrb.mxu0 %v254_v2  ;;  %449 = vmatpush.msrb.mxu1 %v271_v3  ;;  %v581_v3 = vld [vmem:[%s1368_s2 + $0x40] sm:$0xff] }
  0x4f   : > { %473 = vmatpush.msrb.mxu2 %v286_v4  ;;  %495 = vmatpush.msrb.mxu3 %v303_v5  ;;  %v813_v4 = vld [vmem:[%s1368_s2 + $0x60] ss:$0 sm:$0xff] }
  0x50   : > { %428 = vmatmul.f32.vlgmr.msrb.gmra.mxu0 %v178_v6  ;;  %474 = vmatmul.f32.vlgmr.msrb.gmra.mxu2 %v180_v7 }
  0x51   : > { %450 = vmatpush.msrb.mxu1 %v270_v8  ;;  %496 = vmatpush.msrb.mxu3 %v302_v9 }
  0x52   : > { %451 = vmatmul.f32.vlgmr.msrb.gmra.mxu1 %v179_v10  ;;  %497 = vmatmul.f32.vlgmr.msrb.gmra.mxu3 %v181_v11 }
  0x53   : > { %531 = vmatpush.msra.mxu0 %v509_v16  ;;  %795 = vmatpush.msra.mxu3 %v509_v16 }
  0x54   : > { %568 = vmatpush.msra.mxu1 %v547_v26  ;;  %604 = vmatpush.msra.mxu2 %v582_v59 }
  0x55   : > { %532 = vmatpush.msra.mxu0 %v508_v17  ;;  %796 = vmatpush.msra.mxu3 %v508_v17 }
  0x56   : > { %569 = vmatpush.msra.mxu1 %v546_v27  ;;  %605 = vmatpush.msra.mxu2 %v581_v3 }
  0x57   : > { %533 = vmatpush.msra.mxu0 %v507_v18  ;;  %797 = vmatpush.msra.mxu3 %v507_v18 }
  0x58   : > { %431 = vmatmul.f32.gmra.mxu0 %v186_v12  ;;  %477 = vmatmul.f32.gmra.mxu2 %v188_v13 }
  0x59   : > { %534 = vmatpush.msra.mxu0 %v506_v19  ;;  %798 = vmatpush.msra.mxu3 %v506_v19 }
  0x5a   : > { %454 = vmatmul.f32.gmra.mxu1 %v187_v14  ;;  %500 = vmatmul.f32.gmra.mxu3 %v189_v15 }
  0x5b   : > { %570 = vmatpush.msra.mxu1 %v545_v57 }
  0x5d   : > { %571 = vmatpush.msra.mxu1 %v544_v58 }
  0xb9   : > { %v337_v20 = vpop.f32.mrf.mxu0 }
  0xba   : > { %v338_v24 = vadd.f32 %v811_v21, %v337_v20 }
  0xbc   : > { %v360_v22 = vpop.f32.mrf.mxu1 }
  0xbd   : > { %v361_v29 = vadd.f32 %v360_v22, %v338_v24 }
  0xbf   : > { %v383_v23 = vpop.f32.mrf.mxu2 }
  0xc0   : > { %v384_v31 = vadd.f32 %v383_v23, %v361_v29 }
  0xc2   : > { %v406_v25 = vpop.f32.mrf.mxu3 }
  0xc3   : > { %v340_v28 = vpop.f32.mrf.mxu0  ;;  %v407_v34 = vadd.f32 %v406_v25, %v384_v31 }
  0xc4   : > { %v341_v32 = vadd.f32 %v811_v21, %v340_v28 }
  0xc6   : > { %v363_v30 = vpop.f32.mrf.mxu1 }
  0xc7   : > { %v364_v35 = vadd.f32 %v363_v30, %v341_v32 }
  0xc9   : > { %v386_v33 = vpop.f32.mrf.mxu2 }
  0xca   : > { %v387_v40 = vadd.f32 %v386_v33, %v364_v35 }
  0xcc   : > { %v409_v36 = vpop.f32.mrf.mxu3 }
  0xcd   : > { %v429_v37 = vpop.f32.mrf.mxu0  ;;  %v410_v43 = vadd.f32 %v409_v36, %v387_v40  ;;  %v814_v40 = vld [vmem:[%s1368_s2 + $0x68] ss:$0 sm:$0xff] }
  0xce   : > { %v430_v38 = vadd.f32 %v429_v37, %v407_v34 }
  0xcf   : > { %v452_v39 = vpop.f32.mrf.mxu1 }
  0xd0   : > { %v453_v41 = vadd.f32 %v452_v39, %v430_v38  ;;  %v815_v39 = vld [vmem:[%s1368_s2 + $0x70] ss:$0 sm:$0xff] }
  0xd1   : > { %703 = vrot.lane.b32.xlu2 %v815_v39, %s843_s7 }
  0xd3   : > { %v475_v42 = vpop.f32.mrf.mxu2 }
  0xd4   : > { %v476_v44 = vadd.f32 %v475_v42, %v453_v41 }
  0xd5   : > { %v432_v45 = vpop.f32.mrf.mxu0  ;;  %v498_v46 = vpop.f32.mrf.mxu3 }
  0xd6   : > { %v433_v47 = vadd.f32 %v432_v45, %v410_v43  ;;  %v499_v48 = vadd.f32 %v498_v46, %v476_v44 }
  0xd7   : > { %v455_v49 = vpop.f32.mrf.mxu1 }
  0xd8   : > { %v504_v50 = vmax.f32 %v499_v48, 0.0  ;;  %v456_v51 = vadd.f32 %v455_v49, %v433_v47 }
  0xda   : > { %784 = vmatmul.msk.f32.vlgmr.msra.gmra.mxu0 %vm512_vm0, %v504_v50 }
  0xdb   : > { %v478_v52 = vpop.f32.mrf.mxu2 }
  0xdc   : > { %v479_v53 = vadd.f32 %v478_v52, %v456_v51 }
  0xdd   : > { %v501_v54 = vpop.f32.mrf.mxu3 }
  0xde   : > { %v502_v55 = vadd.f32 %v501_v54, %v479_v53 }
  0xe0   : > { %v505_v56 = vmax.f32 %v502_v55, 0.0 }
  0xe2   : > { %785 = vmatmul.msk.f32.vlgmr.msra.gmra.mxu3 %vm512_vm0, %v505_v56 }
 0x157   : > { %v536_v61 = vpop.f32.mrf.mxu0 }
 0x158   : > { %v537_v62 = vadd.f32 %v812_v60, %v536_v61 }
 0x15a   : > { %v542_v63 = vmax.f32 %v537_v62, 0.0 }
 0x15c   : > { %786 = vmatmul.msk.f32.vlgmr.msra.gmra.mxu1 %vm512_vm0, %v542_v63 }
 0x165   : > { %v539_v0 = vpop.f32.mrf.mxu3 }
 0x166   : > { %v540_v1 = vadd.f32 %v812_v60, %v539_v0 }
 0x168   : > { %v543_v2 = vmax.f32 %v540_v1, 0.0 }
 0x16a   : > { %787 = vmatmul.msk.f32.gmra.mxu1 %vm512_vm0, %v543_v2  ;;  %vm719_vm0 = vcmask 31744  }
 0x1d9   : > { %v573_v5 = vpop.f32.mrf.mxu1 }
 0x1da   : > { %v574_v6 = vadd.f32 %v813_v4, %v573_v5 }
 0x1dc   : > { %v579_v7 = vmax.f32 %v574_v6, 0.0 }
 0x1de   : > { %788 = vmatmul.msk.f32.vlgmr.msra.gmra.mxu2 %vm583_vm1, %v579_v7 }
 0x1e7   : > { %v576_v8 = vpop.f32.mrf.mxu1 }
 0x1e8   : > { %v577_v9 = vadd.f32 %v813_v4, %v576_v8 }
 0x1ea   : > { %v580_v10 = vmax.f32 %v577_v9, 0.0 }
 0x1ec   : > { %789 = vmatmul.msk.f32.gmra.mxu2 %vm583_vm1, %v580_v10 }
 0x261   : > { %v1340_v11 = vpop.f32.mrf.mxu2 }
 0x262   : > { %v790_v12 = vmul.f32 -1.442695, %v1340_v11 }
 0x264   : > { %816 = vpow2.f32 %v790_v12 }
 0x26a   : > { %v817_v13 = vpop.eup %816 }
 0x26b   : > { %v621_v14 = vadd.f32 1.0, %v817_v13  ;;  %v704_v13 = vpop.permute.xlu2 %703 }
 0x26d   : > { %818 = vrcp.f32 %v621_v14  ;;  %v634_v20 = vand.u32 2147483648, %v621_v14  ;;  %v632_v23 = vand.u32 2147483647, %v621_v14  ;;  %vm628_vm3 = vweird.f32 %v621_v14 }
 0x26f   : > { %v1343_v15 = vpop.f32.mrf.mxu2  ;;  %v635_v26 = vor.u32 1.1754944e-38, %v634_v20  ;;  %vm633_vm5 = vcmp.eq.f32.partialorder %v632_v23, 8.507059e+37 }
 0x270   : > { %v791_v16 = vmul.f32 -1.442695, %v1343_v15 }
 0x272   : > { %820 = vpow2.f32 %v791_v16 }
 0x273   : > { %v819_v17 = vpop.eup %818 }
 0x274   : > { %v624_v18 = vmul.f32 %v819_v17, %v621_v14  ;;  %vm629_vm2 = vweird.f32 %v819_v17 }
 0x275   : > { %vm630_vm4 = vmor %vm628_vm3, %vm629_vm2 }
 0x276   : > { %v625_v19 = vsub.f32 1.0, %v624_v18 }
 0x278   : > { %v821_v21 = vpop.eup %820  ;;  %v626_v22 = vmul.f32 %v819_v17, %v625_v19 }
 0x279   : > { %v622_v24 = vadd.f32 1.0, %v821_v21 }
 0x27a   : > { %v627_v25 = vadd.f32 %v819_v17, %v626_v22 }
 0x27b   : > { %822 = vrcp.f32 %v622_v24  ;;  %v649_v32 = vand.u32 2147483648, %v622_v24  ;;  %v647_v34 = vand.u32 2147483647, %v622_v24  ;;  %vm643_vm7 = vweird.f32 %v622_v24 }
 0x27c   : > { %v631_v27 = vsel %vm630_vm4, %v819_v17, %v627_v25  ;;  %824 = vtanh.f32 %v1340_v11 }
 0x27d   : > { %v636_v28 = vsel %vm633_vm5, %v635_v26, %v631_v27  ;;  %v650_v36 = vor.u32 1.1754944e-38, %v649_v32  ;;  %vm648_vm9 = vcmp.eq.f32.partialorder %v647_v34, 8.507059e+37  ;;  %826 = vtanh.f32 %v1343_v15 }
 0x27e   : > { %655 = vrot.lane.b32.xlu0 %v636_v28, %s842_s4 }
 0x281   : > { %v823_v29 = vpop.eup %822 }
 0x282   : > { %v639_v30 = vmul.f32 %v823_v29, %v622_v24  ;;  %vm644_vm6 = vweird.f32 %v823_v29  ;;  %v825_v41 = vpop.eup %824 }
 0x283   : > { %vm645_vm8 = vmor %vm643_vm7, %vm644_vm6  ;;  %v827_v46 = vpop.eup %826 }
 0x284   : > { %v640_v31 = vsub.f32 1.0, %v639_v30 }
 0x286   : > { %v641_v33 = vmul.f32 %v823_v29, %v640_v31 }
 0x288   : > { %v642_v35 = vadd.f32 %v823_v29, %v641_v33 }
 0x28a   : > { %v646_v37 = vsel %vm645_vm8, %v823_v29, %v642_v35 }
 0x28b   : > { %v651_v38 = vsel %vm648_vm9, %v650_v36, %v646_v37 }
 0x28c   : > { %657 = vrot.lane.b32.xlu0 %v651_v38, %s842_s4 }
 0x2f0   : > { %v656_v42 = vpop.permute.xlu0 %655 }
 0x2f1   : > { %v661_v43 = vmul.f32 %v825_v41, %v656_v42 }
 0x2f3   : > { %v665_v44 = vmul.f32 %v814_v40, %v661_v43 }
 0x2f5   : > { %v667_v45 = vsel %vm583_vm1, %v665_v44, 0.0 }
 0x2f6   : > { %668 = vadd.xlane.f32.xlu1 %v667_v45 }
 0x2fe   : > { %v658_v47 = vpop.permute.xlu0 %657 }
 0x2ff   : > { %v662_v48 = vmul.f32 %v827_v46, %v658_v47 }
 0x301   : > { %v666_v49 = vmul.f32 %v814_v40, %v662_v48 }
 0x303   : > { %v670_v50 = vsel %vm583_vm1, %v666_v49, 0.0 }
 0x304   : > { %671 = vadd.xlane.f32.xlu1 %v670_v50 }
 0x369   : > { %v669_v51 = vpop.xlane.xlu1 %668 }
 0x377   : > { %v672_v52 = vpop.xlane.xlu1 %671 }
 0x378   : > { %v673_v53 = vmax.f32 %v669_v51, %v672_v52 }
 0x37a   : > { %v674_v54 = vsub.f32 %v669_v51, %v673_v53  ;;  %v677_v55 = vsub.f32 %v672_v52, %v673_v53 }
 0x37c   : > { %v675_v56 = vmul.f32 1.442695, %v674_v54  ;;  %v678_v57 = vmul.f32 1.442695, %v677_v55 }
 0x37e   : > { %828 = vpow2.f32 %v675_v56 }
 0x37f   : > { %830 = vpow2.f32 %v678_v57 }
 0x384   : > { %v829_v58 = vpop.eup %828 }
 0x385   : > { %v831_v59 = vpop.eup %830 }
 0x386   : > { %v680_v60 = vadd.f32 %v831_v59, %v829_v58 }
 0x388   : > { %832 = vrcp.f32 %v680_v60  ;;  %v692_v0 = vand.u32 2147483648, %v680_v60  ;;  %v690_v2 = vand.u32 2147483647, %v680_v60  ;;  %vm686_vm11 = vweird.f32 %v680_v60 }
 0x38a   : > { %v693_v4 = vor.u32 1.1754944e-38, %v692_v0  ;;  %vm691_vm13 = vcmp.eq.f32.partialorder %v690_v2, 8.507059e+37 }
 0x38e   : > { %v833_v61 = vpop.eup %832 }
 0x38f   : > { %v682_v62 = vmul.f32 %v833_v61, %v680_v60  ;;  %vm687_vm10 = vweird.f32 %v833_v61 }
 0x390   : > { %vm688_vm12 = vmor %vm686_vm11, %vm687_vm10 }
 0x391   : > { %v683_v63 = vsub.f32 1.0, %v682_v62 }
 0x393   : > { %v684_v1 = vmul.f32 %v833_v61, %v683_v63 }
 0x395   : > { %v685_v3 = vadd.f32 %v833_v61, %v684_v1 }
 0x397   : > { %v689_v5 = vsel %vm688_vm12, %v833_v61, %v685_v3 }
 0x398   : > { %v694_v6 = vsel %vm691_vm13, %v693_v4, %v689_v5 }
 0x399   : > { %v695_v7 = vmul.f32 %v829_v58, %v694_v6  ;;  %v696_v8 = vmul.f32 %v831_v59, %v694_v6 }
 0x39b   : > { %v708_v9 = vsel %vm707_vm14, %v695_v7, %v696_v8  ;;  %v697_v10 = vmul.f32 %v695_v7, %v1340_v11  ;;  %v698_v12 = vmul.f32 %v696_v8, %v1343_v15 }
 0x39c   : > { %714 = vrot.lane.b32.xlu0 %v708_v9, %s844_s9 }
 0x39d   : > { %v699_v14 = vadd.f32 %v698_v12, %v697_v10 }
 0x39f   : > { %v706_v16 = vadd.f32 %v704_v13, %v699_v14 }
 0x3a1   : > { %710 = vrot.lane.b32.xlu2 %v706_v16, %s845_s10 }
 0x3fb   : > { %v711_v17 = vpop.permute.xlu2 %710 }
 0x40e   : > { %v715_v11 = vpop.permute.xlu0 %714 }
 0x40f   : > { %v718_v18 = vsel %vm717_vm15, %v711_v17, %v715_v11 }
 0x410   : > { %v720_v15 = vsel %vm719_vm0, %v718_v18, 0.0 }
 0x411   : > { %721 = vst [vmem:[%s173_s17] sm:$0xff] %v720_v15 }
 0x412 PF: > { %s13_s12 = sadd.s32 1, %s840_s12  }
 0x413   : > { %p10_p5 = scmp.ge.s32.totalorder %s13_s12, 4  }
 0x415   :  { %12 = sbr.rel (!%p10_p5) target bundleno = 1 (0x1), region = 62 }

</bundles_post_ra>
